<compile_context>
chip_gen: v5e
topology: v5e:2x2
jax: 0.10.0
libtpu: 0.0.40
codegen_flags: <defaults>
</compile_context>

<pallas_src>
import jax
import jax.numpy as jnp
from jax import lax
from jax.experimental import pallas as pl
from jax.experimental.pallas import tpu as pltpu


def _round_up(x, m):
    return ((x + m - 1) // m) * m


def _probe_buffered_support():
    """Explicit capability check for pl.Buffered / pipeline_mode=.

    Only this tiny BlockSpec construction is probed; real pallas_call compile
    errors are never swallowed.
    """
    if not hasattr(pl, "Buffered"):
        return False
    try:
        pl.BlockSpec((8, 128), lambda i: (i, 0), pipeline_mode=pl.Buffered(1))
        return True
    except TypeError:
        return False


_HAS_BUFFERED = _probe_buffered_support()


def _physical_vmem_bytes():
    try:
        return int(pltpu.get_tpu_info().vmem_capacity_bytes)
    except Exception:
        # Introspection unavailable -> assume the smallest part (v7x: 64 MiB).
        return 64 << 20


def _projector_kernel(x_ref, w_ref, b_ref, o_ref):
    # x_ref: (tm, K), w_ref: (K, tn) pre-transposed, b_ref: (1, tn), o_ref: (tm, tn)
    x = x_ref[...]
    w = w_ref[...]
    if x.dtype != w.dtype:
        # In-kernel cast (e.g. f32 -> bf16): free VPU work under the MXU,
        # avoids a separate HBM read+write pass over x in the wrapper.
        x = x.astype(w.dtype)
    acc = lax.dot_general(
        x, w,
        dimension_numbers=(((1,), (0,)), ((), ())),   # canonical x @ W_t on the MXU
        preferred_element_type=jnp.float32,
    )
    acc = acc + b_ref[...].astype(jnp.float32)        # f32 bias add, broadcast over rows
    o_ref[...] = acc.astype(o_ref.dtype)


def prepare_projector_weight(weight, compute_dtype=None):
    """One-time (init-time) conversion of the PyTorch nn.Linear weight.

    weight: [N, K] (PyTorch Linear layout) -> returns [K, N], optionally cast
    to `compute_dtype` (e.g. jnp.bfloat16) so the dominant weight HBM stream is
    halved on every call without a per-call astype.
    """
    w_t = jnp.transpose(weight)            # [K, N]
    if compute_dtype is not None:
        w_t = w_t.astype(compute_dtype)
    return w_t


def _build_projector_call(M, K, N, tm, tn, x_dtype, w_dtype, b_dtype, out_dtype):
    m_tiles = pl.cdiv(M, tm)
    n_tiles = pl.cdiv(N, tn)
    # N outer, M inner: the weight block index is constant across the inner M
    # loop, so Pallas re-DMAs the weight only n_tiles times total.
    grid = (n_tiles, m_tiles)

    # When the whole N fits in a single tile the weight/bias blocks are
    # grid-invariant: request single buffering to halve their VMEM footprint.
    single_buffer_w = _HAS_BUFFERED and n_tiles == 1

    if single_buffer_w:
        w_spec = pl.BlockSpec((K, tn), lambda j, i: (0, j),
                              pipeline_mode=pl.Buffered(1))
        b_spec = pl.BlockSpec((1, tn), lambda j, i: (0, j),
                              pipeline_mode=pl.Buffered(1))
    else:
        w_spec = pl.BlockSpec((K, tn), lambda j, i: (0, j))
        b_spec = pl.BlockSpec((1, tn), lambda j, i: (0, j))

    in_specs = [
        pl.BlockSpec((tm, K), lambda j, i: (i, 0)),    # x row-tile (pipelined)
        w_spec,                                        # weight [K, tn]
        b_spec,                                        # bias   [1, tn]
    ]
    out_specs = pl.BlockSpec((tm, tn), lambda j, i: (i, j))

    # VMEM budget: never below the actual need, clamped under physical VMEM.
    w_bufs = 1 if single_buffer_w else 2
    need = (2 * tm * K * jnp.dtype(x_dtype).itemsize          # x double-buffered
            + w_bufs * K * tn * jnp.dtype(w_dtype).itemsize   # weight
            + w_bufs * tn * jnp.dtype(b_dtype).itemsize       # bias
            + 2 * tm * tn * jnp.dtype(out_dtype).itemsize)    # out double-buffered
    headroom = 8 << 20                                        # compiler scratch etc.
    cap = _physical_vmem_bytes() - (8 << 20)
    vmem_limit = int(min(cap, max(32 << 20, need + headroom)))

    flops = 2 * M * K * N
    bytes_accessed = (M * K * jnp.dtype(x_dtype).itemsize
                      + N * K * jnp.dtype(w_dtype).itemsize
                      + N * jnp.dtype(b_dtype).itemsize
                      + M * N * jnp.dtype(out_dtype).itemsize)

    return pl.pallas_call(
        _projector_kernel,
        out_shape=jax.ShapeDtypeStruct((M, N), out_dtype),
        grid_spec=pltpu.PrefetchScalarGridSpec(
            num_scalar_prefetch=0,
            grid=grid,
            in_specs=in_specs,
            out_specs=out_specs,
        ),
        compiler_params=pltpu.CompilerParams(
            dimension_semantics=("parallel", "parallel"),  # v7x: split N or M over 2 TCs
            vmem_limit_bytes=vmem_limit,
        ),
        cost_estimate=pl.CostEstimate(
            flops=flops, bytes_accessed=bytes_accessed, transcendentals=0),
    )


def paligemma_multimodal_projector(image_features, weight_t, bias, *,
                                   block_m=512, block_n=None):
    """PaliGemmaMultiModalProjector forward.

    image_features: [B, S, K]
    weight_t:       [K, N] pre-transposed weight from prepare_projector_weight()
                    (f32 for exact PyTorch semantics, or bf16 for the production
                    low-precision path; x is cast in-kernel to match).
    bias:           [N] (kept f32 for the f32 bias add).
    Returns [B, S, N] in image_features.dtype; accumulation is always f32.
    """
    B, S, K = image_features.shape
    K_w, N = weight_t.shape
    assert K == K_w, (K, K_w)
    M = B * S
    out_dtype = image_features.dtype

    x2d = image_features.reshape(M, K)
    b2d = bias.reshape(1, N).astype(jnp.float32)

    # Row tile: multiple of 8 sublanes, capped at block_m, and >= 2 grid steps
    # so the x/out DMAs actually pipeline (and megacore has work to split).
    tm = max(8, min(block_m, _round_up(pl.cdiv(M, 2), 8)))

    # Split N into a second parallel axis when each half stays lane-dense
    # (multiple of 128): v7x TensorCores then share the weight instead of each
    # pulling the full copy into their own VMEM.
    if block_n is not None:
        tn = block_n
    elif N % 256 == 0:
        tn = N // 2
    else:
        tn = N

    call = _build_projector_call(M, K, N, tm, tn,
                                 x2d.dtype, weight_t.dtype, b2d.dtype, out_dtype)
    out2d = call(x2d, weight_t, b2d)
    return out2d.reshape(B, S, N)


if __name__ == "__main__":
    key = jax.random.PRNGKey(0)
    k_x, k_w, k_b, k_x2, k_w2, k_b2 = jax.random.split(key, 6)

    # ---- Test 1: small shapes consistent with the module (exact f32 path) ----
    #   vision_hidden=32, projection_dim=64, batch=2, num_patches=8.
    #   (Correctness only; production shapes are K=1152, N=2048, M=B*256.)
    batch, num_patches = 2, 8
    vision_hidden, projection_dim = 32, 64

    image_features = jax.random.normal(
        k_x, (batch, num_patches, vision_hidden), dtype=jnp.float32)
    weight = jax.random.normal(
        k_w, (projection_dim, vision_hidden), dtype=jnp.float32) * 0.02
    bias = jax.random.normal(k_b, (projection_dim,), dtype=jnp.float32) * 0.02

    ref = image_features @ weight.T + bias

    w_t = prepare_projector_weight(weight)          # one-time [K, N] transpose
    out = paligemma_multimodal_projector(image_features, w_t, bias)
    out = jax.block_until_ready(out)
    assert out.shape == (batch, num_patches, projection_dim)
    assert jnp.allclose(out, ref, atol=1e-5, rtol=1e-5)

    # ---- Test 2: N-split grid axis (lane-dense halves), exact f32 ----
    B2, S2, K2, N2 = 1, 64, 128, 256
    x2 = jax.random.normal(k_x2, (B2, S2, K2), dtype=jnp.float32)
    w2 = jax.random.normal(k_w2, (N2, K2), dtype=jnp.float32) * 0.02
    b2 = jax.random.normal(k_b2, (N2,), dtype=jnp.float32) * 0.02
    ref2 = x2 @ w2.T + b2

    w2_t = prepare_projector_weight(w2)
    out2 = paligemma_multimodal_projector(x2, w2_t, b2)
    out2 = jax.block_until_ready(out2)
    assert out2.shape == (B2, S2, N2)
    assert jnp.allclose(out2, ref2, atol=1e-5, rtol=1e-5)

    # ---- Test 3: production-style path: bf16 stored weight, x cast in-kernel ----
    w2_bf16 = prepare_projector_weight(w2, compute_dtype=jnp.bfloat16)
    out2_bf16 = paligemma_multimodal_projector(x2, w2_bf16, b2)
    out2_bf16 = jax.block_until_ready(out2_bf16)
    assert jnp.allclose(out2_bf16, ref2, atol=2e-2, rtol=2e-2)

    print("KERNEL_OK")
</pallas_src>

<mosaic_0001>
module attributes {stable_mosaic.version = 11 : i64} {
  func.func @_projector_kernel(%arg0: i32, %arg1: i32, %arg2: memref<8x32xf32, #tpu.memory_space<vmem>>, %arg3: memref<32x64xf32, #tpu.memory_space<vmem>>, %arg4: memref<1x64xf32, #tpu.memory_space<vmem>>, %arg5: memref<8x64xf32, #tpu.memory_space<vmem>>) attributes {dimension_semantics = [#tpu.dimension_semantics<parallel>, #tpu.dimension_semantics<parallel>], iteration_bounds = array<i64: 1, 2>, scalar_prefetch = 0 : i64, scratch_operands = 0 : i64, tpu.core_type = #tpu.core_type<tc>, window_params = [{transform_indices = @transform_0, window_bounds = array<i64: 8, 32>}, {pipeline_mode = #tpu.pipeline_mode<synchronous>, transform_indices = @transform_1, window_bounds = array<i64: 32, 64>}, {pipeline_mode = #tpu.pipeline_mode<synchronous>, transform_indices = @transform_2, window_bounds = array<i64: 1, 64>}, {transform_indices = @transform_3, window_bounds = array<i64: 8, 64>}]} {
    %c0 = arith.constant 0 : index
    %c0_0 = arith.constant 0 : index
    %0 = vector.load %arg2[%c0, %c0_0] : memref<8x32xf32, #tpu.memory_space<vmem>>, vector<8x32xf32>
    %c0_1 = arith.constant 0 : index
    %c0_2 = arith.constant 0 : index
    %1 = vector.load %arg3[%c0_1, %c0_2] : memref<32x64xf32, #tpu.memory_space<vmem>>, vector<32x64xf32>
    %cst = arith.constant dense<0.000000e+00> : vector<8x64xf32>
    %2 = tpu.matmul %0, %1, %cst {dimension_numbers = #tpu.dot_dimension_numbers<[1], [0], [0], [1], [0, 0, 1, 1], [], []>} : vector<8x32xf32>, vector<32x64xf32>, vector<8x64xf32> -> vector<8x64xf32>
    %c0_3 = arith.constant 0 : index
    %c0_4 = arith.constant 0 : index
    %3 = vector.load %arg4[%c0_3, %c0_4] : memref<1x64xf32, #tpu.memory_space<vmem>>, vector<1x64xf32>
    %4 = vector.broadcast %3 : vector<1x64xf32> to vector<8x64xf32>
    %5 = arith.addf %2, %4 : vector<8x64xf32>
    %c0_5 = arith.constant 0 : index
    %c0_6 = arith.constant 0 : index
    %6 = vector.load %arg5[%c0_5, %c0_6] : memref<8x64xf32, #tpu.memory_space<vmem>>, vector<8x64xf32>
    tpu.vector_store %arg5[%c0_5, %c0_6], %5 {strides = array<i32>} : memref<8x64xf32, #tpu.memory_space<vmem>>, vector<8x64xf32>,
    return
  }
  func.func @transform_0(%arg0: i32, %arg1: i32) -> (i32, i32) {
    %c0_i32 = arith.constant 0 : i32
    %c0_i32_0 = arith.constant 0 : i32
    return %arg1, %c0_i32 : i32, i32
  }
  func.func @transform_1(%arg0: i32, %arg1: i32) -> (i32, i32) {
    %c0_i32 = arith.constant 0 : i32
    %c0_i32_0 = arith.constant 0 : i32
    return %c0_i32, %arg0 : i32, i32
  }
  func.func @transform_2(%arg0: i32, %arg1: i32) -> (i32, i32) {
    %c0_i32 = arith.constant 0 : i32
    %c0_i32_0 = arith.constant 0 : i32
    return %c0_i32, %arg0 : i32, i32
  }
  func.func @transform_3(%arg0: i32, %arg1: i32) -> (i32, i32) {
    %c0_i32 = arith.constant 0 : i32
    return %arg1, %arg0 : i32, i32
  }
}

</mosaic_0001>

<bundles_post_ra>
// kernel: tpu_custom_call.1
= control target key start
LH: loop header
LB: loop body
LE: loop exit
PB: predicated region body
PF: predicated region fallthrough
CT: control target
= control target key end

     0   :  { %8 = vsyncpa [#allocation3], 0  ;;  %s805_s0 = inlined_call_operand.hbm [shape: f32[16,32], index: 0, kind: input, shape index: {}]   ;;  %s806_s1 = inlined_call_operand.hbm [shape: f32[32,64], index: 1, kind: input, shape index: {}]   ;;  %s807_s2 = inlined_call_operand.vmem [shape: f32[1,64], index: 2, kind: input, shape index: {}]   ;;  %s808_s3 = inlined_call_operand.hbm [shape: f32[16,64], index: 3, kind: output, shape index: {}]  }
   0x1   :  { %10 = vsyncpa [#allocation3 + $0x1], 0 }
   0x2   :  { %11 = vsyncpa [#allocation6], 0 }
   0x3   :  { %12 = vsyncpa [#allocation4], 0 }
   0x4   :  { %14 = vsyncpa [#allocation4 + $0x1], 0  ;;  %s659_s12 = smov 0   ;;  %s661_s13 = smov 0  }
   0x5   :  { %s663_s14 = smov 0   ;;  %s665_s15 = smov 0  }
   0x6   :  { %s667_s16 = smov 0   ;;  %s669_s17 = smov 0  }
   0x7 LB: > { %s395_s18 = sadd.s32 4294967295, %s634_s17   ;;  %p397_p0 = scmp.ge.s32.totalorder %s634_s17, 1  ;;  %s634_s17 = sphi %s669_s17, %s20_s17   ;;  %s630_s16 = sphi %s667_s16, %s819_s16   ;;  %s626_s15 = sphi %s665_s15, %s818_s15   ;;  %s622_s14 = sphi %s663_s14, %s817_s14   ;;  %s618_s13 = sphi %s661_s13, %s816_s13   ;;  %s614_s12 = sphi %s659_s12, %s815_s12  }
   0x8   : > { %p691_p1 = scmp.eq.s32.totalorder %s395_s18, 0  ;;  %p143_p2 = scmp.lt.s32.totalorder %s634_s17, 3 }
   0x9   : > { %s156_s22 = sshll.u32 %s806_s1, 4  ;;  %s636_s24 = smov [#allocation5]   ;;  %s157_s22 = int_to_ptr.hbm [resolvable:$true] %s156_s22 }
   0xa   : > { %p699_p3 = pnand %p397_p0, %p143_p2  ;;  %s158_s25 = sshll.u32 %s636_s24, 4  ;;  %s159_s25 = int_to_ptr.vmem [resolvable:$true] %s158_s25 }
   0xb   : > { %p400_p6 = scmp.ge.s32.totalorder %s634_s17, 2  ;;  %s637_s26 = smov 128  }
   0xc   : > { %p420_p4 = pneg %p699_p3  ;;  %s638_s27 = smov 8  }
   0xd   : > { %s396_s28 = sadd.s32 4294967294, %s634_s17   ;;  %s29_s29 = sadd.s32 1, %s630_s16 }
   0xe   : > { %p421_p5 = pnand %p420_p4, %p691_p1  ;;  %s39_s30 = sadd.s32 1, %s622_s14 }
   0xf   : > { %p30_p7 = scmp.ge.s32.totalorder %s29_s29, 2  ;;  %p46_p8 = scmp.ne.s32.totalorder %s622_s14, %s618_s13 }
  0x10   : > { %423 = dma.hbm_to_vmem [thread:$0]  (!%p421_p5), %s157_s22, 512, %s159_s25, [#allocation6], %s637_s26, %s637_s26, %s638_s27  }
  0x11   : > { %p47_p9 = scmp.eq.s32.totalorder %s634_s17, 0  ;;  %p52_p10 = scmp.ne.s32.totalorder %s618_s13, %s614_s12 }
  0x12   : > { %s821_s29 = smov (%p30_p7, %s29_s29), 0  ;;  %p130_p13 = scmp.eq.s32.totalorder %s395_s18, 1 }
  0x13   : > { %p718_p11 = por %p47_p9, %p46_p8  ;;  %p724_p12 = por %p691_p1, %p52_p10 }
  0x14   : > { %s36_s6 = ssub.s32 %s630_s16, %s821_s29  ;;  %p136_p2 = scmp.eq.s32.totalorder %s396_s28, 1 }
  0x15   : > { %p37_p0 = scmp.eq.s32.totalorder %s36_s6, 0  ;;  %p730_p4 = por %p130_p13, %p46_p8 }
  0x16   : > { %p433_p5 = scmp.lt.s32.totalorder %s634_s17, 2  ;;  %p738_p7 = por %p136_p2, %p52_p10 }
  0x17   : > { %s736_s8 = scalar_select %p37_p0, %s622_s14, %s39_s30  }
  0x18   : > { %s178_s10 = sand.u32 1, %s622_s14   ;;  %s402_s20 = sshll.u32 %s630_s16, 3 }
  0x19   : > { %s401_s11 = sshll.u32 %s178_s10, 3  ;;  %s186_s18 = scalar_lea.hbm %s805_s0, %s402_s20 }
  0x1a   : > { %s182_s24 = scalar_lea.vmem [#allocation2], %s401_s11  ;;  %s188_s26 = sshll.u32 %s186_s18, 4  ;;  %s189_s26 = int_to_ptr.hbm [resolvable:$true] %s188_s26 }
  0x1b   : > { %s190_s25 = sshll.u32 %s182_s24, 4  ;;  %p425_p8 = pnand %p433_p5, %p718_p11  ;;  %s191_s25 = int_to_ptr.vmem [resolvable:$true] %s190_s25 }
  0x1c   : > { %s179_s27 = scalar_lea.sflag [#allocation3], %s178_s10  ;;  %199 = sbr.rel (%p699_p3) target bundleno = 175 (0xaf), region = 32 }
  0x1d   : > { %427 = dma.hbm_to_vmem [thread:$0]  (!%p425_p8), %s189_s26, 128, %s191_s25, %s179_s27  }
  0x1e   : > { %s752_s28 = sand.u32 (!%p699_p3), 1, %s618_s13  }
  0x1f   : > { %s404_s30 = sshll.u32 (!%p699_p3), %s752_s28, 3  ;;  %s202_s6 = scalar_lea.sflag (!%p699_p3), [#allocation3], %s752_s28 }
  0x20   : > { %s205_s11 = scalar_lea.vmem (!%p699_p3), [#allocation2], %s404_s30 }
  0x21   : > { %601 = dma.done.wait (%p724_p12), %s202_s6, 128  }
  0x22   : > { %603 = vsyncadd (%p724_p12), %s202_s6, 4294967168 }
  0x23   : > { %605 = dma.done.wait (%p691_p1), [#allocation6], 512  }
  0x24   : > { %607 = vsyncadd (%p691_p1), [#allocation6], 4294966784  ;;  %v244_v0 = vld [vmem:[#allocation5 + $0x18] sm:$0xff]  ;;  %v243_v1 = vld [vmem:[#allocation5 + $0x10] sm:$0xff]  ;;  %vm249_vm0 = vcmask 261120   ;;  %s409_s23 = sshll.u32 %s626_s15, 3 }
  0x25   : > { %265 = vmatpush.msra.mxu0 %v244_v0  ;;  %v242_v2 = vld [vmem:[#allocation5 + $0x8] sm:$0xff]  ;;  %v241_v3 = vld [vmem:[#allocation5] sm:$0xff]  ;;  %v240_v4 = vld [vmem:[%s205_s11] sm:$0xff]  ;;  %s287_s10 = scalar_lea.hbm %s808_s3, %s409_s23  ;;  %s236_s21 = scalar_lea.vmem [#allocation7], %s404_s30  ;;  %vm273_vm1 = vcmask 523264  }
  0x26   : > { %v487_v5 = vld [vmem:[%s807_s2] ss:$0 sm:$0xff]  ;;  %s289_s22 = sshll.u32 %s236_s21, 4  ;;  %s291_s18 = sshll.u32 %s287_s10, 4  ;;  %s290_s22 = int_to_ptr.vmem [resolvable:$true] %s289_s22  ;;  %s292_s18 = int_to_ptr.hbm [resolvable:$true] %s291_s18 }
  0x27   : > { %266 = vmatpush.msra.mxu0 %v243_v1  ;;  %s276_s24 = scalar_lea.sflag [#allocation4], %s752_s28  ;;  %s562_s15 = sshra.s32 %s292_s18, 4  ;;  %s563_s15 = int_to_ptr.hbm [resolvable:$true] %s562_s15 }
  0x28   : > { %s564_s25 = scalar_lea.hbm %s563_s15, 8  ;;  %s568_s30 = scalar_lea.hbm %s808_s3, 16 }
  0x29   : > { %267 = vmatpush.msra.mxu0 %v242_v2  ;;  %p565_p1 = scmp.ne.s32.totalorder %s563_s15, %s564_s25  ;;  %p569_p10 = scmp.lt.s32.totalorder %s563_s15, %s808_s3 }
  0x2a   : > { %p570_p11 = scmp.lt.s32.totalorder %s568_s30, %s564_s25 }
  0x2b   : > { %268 = vmatpush.msra.mxu0 %v241_v3  ;;  %p566_p3 = pnand %p565_p1, %p730_p4 }
  0x2c   : > { %407 = vmatmul.msk.f32.vlgmr.msra.gmra.mxu0 %vm249_vm0, %v240_v4  ;;  %p571_p12 = por %p570_p11, %p569_p10 }
  0x2d   : > { %p567_p9 = pneg %p566_p3 }
  0x2f   : > { %p572_p13 = pnand %p571_p12, %p567_p9 }
  0xa9   : > { %v270_v6 = vpop.f32.mrf.mxu0 }
  0xaa   : > { %v271_v7 = vadd.f32 %v487_v5, %v270_v6 }
  0xac   : > { %274 = vst.msk [vmem:[%s236_s21] sm:$0xff] %vm273_vm1, %v271_v7 }
  0xad   : > { %575 = shalt.err (!%p572_p13)
}
  0xae   : > { %418 = dma.vmem_to_hbm [thread:$0]  (%p730_p4), %s290_s22, 128, %s292_s18, %s276_s24  }
  0xaf PF: > { %s303_s28 = sand.u32 1, %s614_s12   ;;  %p429_p0 = pnand %p400_p6, %p738_p7 }
  0xb0   : > { %s304_s23 = scalar_lea.sflag [#allocation4], %s303_s28 }
  0xb1   : > { %p430_p2 = pneg %p429_p0 }
  0xb3   : > { %609 = dma.done.wait (%p430_p2), %s304_s23, 128  }
  0xb4   : > { %611 = vsyncadd (%p430_p2), %s304_s23, 4294967168  ;;  %s20_s17 = sadd.s32 1, %s634_s17   ;;  %s815_s12 = smov %s618_s13 }
  0xb5   : > { %p17_p5 = scmp.ge.s32.totalorder %s20_s17, 4   ;;  %s816_s13 = smov %s622_s14 }
  0xb6   : > { %s817_s14 = smov %s736_s8  ;;  %s818_s15 = smov %s630_s16 }
  0xb7   : > { %s819_s16 = smov %s821_s29  ;;  %19 = sbr.rel (!%p17_p5) target bundleno = 7 (0x7), region = 85 }
  0xbc   :  { %310 = vsyncpa [#allocation3], 1 }
  0xbd   :  { %312 = vsyncpa [#allocation3 + $0x1], 1 }
  0xbe   :  { %313 = vsyncpa [#allocation6], 1 }
  0xbf   :  { %314 = vsyncpa [#allocation4], 1 }
  0xc0   :  { %316 = vsyncpa [#allocation4 + $0x1], 1 }

</bundles_post_ra>
